<compile_context>
chip_gen: v7x
topology: tpu7x:2x2x1
jax: 0.10.0
libtpu: 0.0.40
codegen_flags: <defaults>
</compile_context>

<pallas_src>
import jax
import jax.numpy as jnp
from jax.experimental import pallas as pl
from jax.experimental.pallas import tpu as pltpu

EPS = 1e-5  # nn.LayerNorm default


def _patch_merge_kernel(a_ref, w_ref, b_ref, o_ref):
    # a_ref: (TR, 2, Wh, 2C)  contiguous slab of x viewed as (R, 2, Wh, 2C);
    #                         [:, 0] carries [x0 | x2], [:, 1] carries [x1 | x3]
    # w_ref: (4C, 2C)         gamma-folded weight, rows ordered [x0, x2, x1, x3]
    # b_ref: (1, 2C)          beta @ W.T   (f32)
    # o_ref: (TR, Wh, 2C)
    tr, _, wh, c2 = a_ref.shape
    rows = tr * wh

    a = a_ref[...]
    a0 = a[:, 0].reshape(rows, c2)                       # [x0 | x2]
    a1 = a[:, 1].reshape(rows, c2)                       # [x1 | x3]
    xcat = jnp.concatenate([a0, a1], axis=-1)            # (rows, 4C): [x0,x2,x1,x3]

    # LayerNorm statistics in f32 regardless of streamed dtype.
    xf = xcat.astype(jnp.float32)
    inv_4c = 1.0 / (2 * c2)                              # 4C == 2 * (2C)
    mean = jnp.sum(xf, axis=-1, keepdims=True) * inv_4c
    cen = xf - mean
    var = jnp.sum(cen * cen, axis=-1, keepdims=True) * inv_4c
    rstd = jax.lax.rsqrt(var + EPS)

    # Single K=4C MXU dot; per-row rstd applied after the matmul so the EUP
    # rsqrt does not gate vmatmul issue (and one (rows,4C) VPU mul is saved).
    acc = jnp.dot(cen.astype(w_ref.dtype), w_ref[...],
                  preferred_element_type=jnp.float32)
    out = acc * rstd + b_ref[...]
    o_ref[...] = out.reshape(tr, wh, c2).astype(o_ref.dtype)


def patch_merge(x, gamma, beta, w_t):
    """Fused Swin PatchMerge.

    x:     (B, H, W, C)   channels-last activations (f32 or bf16)
    gamma: (4C,)          LayerNorm weight
    beta:  (4C,)          LayerNorm bias
    w_t:   (4C, 2C)       reduction weight, already transposed (Linear.weight.T)
    returns (B, H//2, W//2, 2C) in x.dtype
    """
    B, H, W, C = x.shape
    assert H % 2 == 0 and W % 2 == 0, "H and W must be even"
    Hh, Wh = H // 2, W // 2
    C2, C4 = 2 * C, 4 * C
    R = B * Hh                                   # one "super row" per (b, hh)

    # bf16 in -> bf16 streamed blocks + bf16 MXU operands (f32 stats / f32 acc);
    # f32 in -> f32 operands (keeps tight reference tolerance).
    mxu_dtype = jnp.bfloat16 if x.dtype == jnp.bfloat16 else jnp.float32

    # ---- fold the LayerNorm affine into the reduction weight (tiny, one-time)
    wf = gamma.astype(jnp.float32)[:, None] * w_t.astype(jnp.float32)   # (4C, 2C)
    bias = (beta.astype(jnp.float32) @ w_t.astype(jnp.float32)).reshape(1, C2)
    # Kernel concatenates channels as [x0, x2, x1, x3]; permute weight rows to match.
    w_perm = jnp.concatenate(
        [wf[0:C], wf[2 * C:3 * C], wf[C:2 * C], wf[3 * C:4 * C]], axis=0
    ).astype(mxu_dtype)                                                  # (4C, 2C)

    # ---- free metadata view: x_v[r, dh, ww, dw*C + c] == x[b, 2hh+dh, 2ww+dw, c]
    x_v = x.reshape(R, 2, Wh, C2)

    # ---- generation-dependent tiling -----------------------------------------
    try:
        vmem_cap = int(pltpu.get_tpu_info().vmem_capacity_bytes)
    except Exception:
        vmem_cap = 64 << 20                       # fall back to v7x-conservative
    if vmem_cap >= (100 << 20):                   # v5e / v6e: 128 MiB VMEM
        step_cap_bytes, vmem_ceiling = 20 << 20, 96 << 20
        min_steps, row_target = 2, 8192
    else:                                         # v7x: 64 MiB VMEM per TC
        step_cap_bytes, vmem_ceiling = 10 << 20, 48 << 20
        min_steps, row_target = 4, 4096           # >= 2 grid steps per core

    bpe = x.dtype.itemsize
    bytes_per_super_row = Wh * (C4 + C2) * bpe            # streamed in + out
    tr = max(1, row_target // Wh)
    tr = min(tr, max(1, step_cap_bytes // bytes_per_super_row))
    tr = min(tr, R)
    tr = min(tr, max(1, pl.cdiv(R, min(min_steps, R))))   # enough steps to pipeline
    grid = (pl.cdiv(R, tr),)

    # VMEM budget: double-buffered in+out blocks + in-kernel f32 temporaries.
    rows = tr * Wh
    blocks = 2 * tr * bytes_per_super_row
    tmp = rows * (3 * C4 + 2 * C2) * 4
    vmem_limit = int(min(max(blocks + tmp + (8 << 20), 32 << 20), vmem_ceiling))

    out3 = pl.pallas_call(
        _patch_merge_kernel,
        out_shape=jax.ShapeDtypeStruct((R, Wh, C2), x.dtype),
        grid_spec=pltpu.PrefetchScalarGridSpec(
            num_scalar_prefetch=0,
            grid=grid,
            in_specs=[
                # one fully contiguous block per step (both image rows of each patch)
                pl.BlockSpec((tr, 2, Wh, C2), lambda i: (i, 0, 0, 0)),
                pl.BlockSpec((C4, C2), lambda i: (0, 0)),
                pl.BlockSpec((1, C2), lambda i: (0, 0)),
            ],
            out_specs=pl.BlockSpec((tr, Wh, C2), lambda i: (i, 0, 0)),
        ),
        compiler_params=pltpu.CompilerParams(
            dimension_semantics=("parallel",),
            vmem_limit_bytes=vmem_limit,
        ),
    )(x_v, w_perm, bias)

    return out3.reshape(B, Hh, Wh, C2)


def _reference(x, gamma, beta, w_t):
    x0 = x[:, 0::2, 0::2, :]
    x1 = x[:, 1::2, 0::2, :]
    x2 = x[:, 0::2, 1::2, :]
    x3 = x[:, 1::2, 1::2, :]
    xm = jnp.concatenate([x0, x1, x2, x3], axis=-1).astype(jnp.float32)
    mean = jnp.mean(xm, axis=-1, keepdims=True)
    var = jnp.mean((xm - mean) ** 2, axis=-1, keepdims=True)
    y = (xm - mean) * jax.lax.rsqrt(var + EPS) * gamma + beta
    return jnp.einsum("bhwk,kn->bhwn", y, w_t)


if __name__ == "__main__":
    key = jax.random.PRNGKey(0)
    jitted = jax.jit(patch_merge)

    cases = [
        # shape,            streamed dtype, max-abs tolerance vs f32 reference
        ((2, 16, 16, 64), jnp.float32, 1e-4),   # lane-dense primary (2C = 128)
        ((1, 10, 16, 32), jnp.float32, 1e-4),   # partial blocks, 2C < 128 lanes
        ((2, 16, 16, 64), jnp.bfloat16, 3e-2),  # bf16 streaming + bf16 MXU path
    ]
    for (B, H, W, C), dtype, tol in cases:
        key, k_x, k_w, k_g, k_b = jax.random.split(key, 5)
        C4, C2 = 4 * C, 2 * C

        x = jax.random.normal(k_x, (B, H, W, C), dtype=jnp.float32)
        # nn.Linear(4C, 2C, bias=False): weight is (2C, 4C); kernel takes W.T.
        w = 0.02 * jax.random.normal(k_w, (C2, C4), dtype=jnp.float32)
        w_t = w.T
        gamma = 1.0 + 0.1 * jax.random.normal(k_g, (C4,), dtype=jnp.float32)
        beta = 0.1 * jax.random.normal(k_b, (C4,), dtype=jnp.float32)

        x_in = x.astype(dtype)
        out = jax.block_until_ready(jitted(x_in, gamma, beta, w_t))
        assert out.shape == (B, H // 2, W // 2, C2)
        assert out.dtype == dtype

        ref = _reference(x_in.astype(jnp.float32), gamma, beta, w_t)
        err = float(jnp.max(jnp.abs(out.astype(jnp.float32) - ref)))
        assert err <= tol, (str(dtype), err)

    print("KERNEL_OK")
</pallas_src>

<mosaic_0001>
module attributes {stable_mosaic.version = 11 : i64} {
  func.func @_patch_merge_kernel(%arg0: i32, %arg1: memref<4x2x8x128xf32, #tpu.memory_space<vmem>>, %arg2: memref<256x128xf32, #tpu.memory_space<vmem>>, %arg3: memref<1x128xf32, #tpu.memory_space<vmem>>, %arg4: memref<4x8x128xf32, #tpu.memory_space<vmem>>) attributes {dimension_semantics = [#tpu.dimension_semantics<parallel>], iteration_bounds = array<i64: 4>, scalar_prefetch = 0 : i64, scratch_operands = 0 : i64, tpu.core_type = #tpu.core_type<tc>, window_params = [{transform_indices = @transform_0, window_bounds = array<i64: 4, 2, 8, 128>}, {pipeline_mode = #tpu.pipeline_mode<synchronous>, transform_indices = @transform_1, window_bounds = array<i64: 256, 128>}, {pipeline_mode = #tpu.pipeline_mode<synchronous>, transform_indices = @transform_2, window_bounds = array<i64: 1, 128>}, {transform_indices = @transform_3, window_bounds = array<i64: 4, 8, 128>}]} {
    %c0 = arith.constant 0 : index
    %c0_0 = arith.constant 0 : index
    %c0_1 = arith.constant 0 : index
    %c0_2 = arith.constant 0 : index
    %0 = vector.load %arg1[%c0, %c0_0, %c0_1, %c0_2] : memref<4x2x8x128xf32, #tpu.memory_space<vmem>>, vector<4x2x8x128xf32>
    %1 = vector.extract_strided_slice %0 {offsets = [0, 0, 0, 0], sizes = [4, 1, 8, 128], strides = [1, 1, 1, 1]} : vector<4x2x8x128xf32> to vector<4x1x8x128xf32>
    %2 = vector.shape_cast %1 : vector<4x1x8x128xf32> to vector<4x8x128xf32>
    %3 = vector.shape_cast %2 : vector<4x8x128xf32> to vector<32x128xf32>
    %4 = vector.extract_strided_slice %0 {offsets = [0, 1, 0, 0], sizes = [4, 1, 8, 128], strides = [1, 1, 1, 1]} : vector<4x2x8x128xf32> to vector<4x1x8x128xf32>
    %5 = vector.shape_cast %4 : vector<4x1x8x128xf32> to vector<4x8x128xf32>
    %6 = vector.shape_cast %5 : vector<4x8x128xf32> to vector<32x128xf32>
    %7 = tpu.concatenate %3, %6 in 1 : vector<32x128xf32>, vector<32x128xf32> -> vector<32x256xf32>
    %cst = arith.constant dense<0.000000e+00> : vector<32xf32>
    %8 = vector.multi_reduction <add>, %7, %cst [1] : vector<32x256xf32> to vector<32xf32>
    %9 = vector.shape_cast %8 : vector<32xf32> to vector<32x1xf32>
    %cst_3 = arith.constant 3.906250e-03 : f32
    %10 = vector.broadcast %cst_3 : f32 to vector<32x1xf32>
    %11 = arith.mulf %9, %10 : vector<32x1xf32>
    %12 = vector.broadcast %11 : vector<32x1xf32> to vector<32x256xf32>
    %13 = arith.subf %7, %12 : vector<32x256xf32>
    %14 = arith.mulf %13, %13 : vector<32x256xf32>
    %cst_4 = arith.constant dense<0.000000e+00> : vector<32xf32>
    %15 = vector.multi_reduction <add>, %14, %cst_4 [1] : vector<32x256xf32> to vector<32xf32>
    %16 = vector.shape_cast %15 : vector<32xf32> to vector<32x1xf32>
    %cst_5 = arith.constant 3.906250e-03 : f32
    %17 = vector.broadcast %cst_5 : f32 to vector<32x1xf32>
    %18 = arith.mulf %16, %17 : vector<32x1xf32>
    %cst_6 = arith.constant 9.99999974E-6 : f32
    %19 = vector.broadcast %cst_6 : f32 to vector<32x1xf32>
    %20 = arith.addf %18, %19 : vector<32x1xf32>
    %21 = math.rsqrt %20 : vector<32x1xf32>
    %c0_7 = arith.constant 0 : index
    %c0_8 = arith.constant 0 : index
    %22 = vector.load %arg2[%c0_7, %c0_8] : memref<256x128xf32, #tpu.memory_space<vmem>>, vector<256x128xf32>
    %cst_9 = arith.constant dense<0.000000e+00> : vector<32x128xf32>
    %23 = tpu.matmul %13, %22, %cst_9 {dimension_numbers = #tpu.dot_dimension_numbers<[1], [0], [0], [1], [0, 0, 1, 1], [], []>} : vector<32x256xf32>, vector<256x128xf32>, vector<32x128xf32> -> vector<32x128xf32>
    %24 = vector.broadcast %21 : vector<32x1xf32> to vector<32x128xf32>
    %25 = arith.mulf %23, %24 : vector<32x128xf32>
    %c0_10 = arith.constant 0 : index
    %c0_11 = arith.constant 0 : index
    %26 = vector.load %arg3[%c0_10, %c0_11] : memref<1x128xf32, #tpu.memory_space<vmem>>, vector<1x128xf32>
    %27 = vector.broadcast %26 : vector<1x128xf32> to vector<32x128xf32>
    %28 = arith.addf %25, %27 : vector<32x128xf32>
    %29 = vector.shape_cast %28 : vector<32x128xf32> to vector<4x8x128xf32>
    %c0_12 = arith.constant 0 : index
    %c0_13 = arith.constant 0 : index
    %c0_14 = arith.constant 0 : index
    %30 = vector.load %arg4[%c0_12, %c0_13, %c0_14] : memref<4x8x128xf32, #tpu.memory_space<vmem>>, vector<4x8x128xf32>
    tpu.vector_store %arg4[%c0_12, %c0_13, %c0_14], %29 {strides = array<i32>} : memref<4x8x128xf32, #tpu.memory_space<vmem>>, vector<4x8x128xf32>,
    return
  }
  func.func @transform_0(%arg0: i32) -> (i32, i32, i32, i32) {
    %c0_i32 = arith.constant 0 : i32
    %c0_i32_0 = arith.constant 0 : i32
    %c0_i32_1 = arith.constant 0 : i32
    %c0_i32_2 = arith.constant 0 : i32
    return %arg0, %c0_i32, %c0_i32_0, %c0_i32_1 : i32, i32, i32, i32
  }
  func.func @transform_1(%arg0: i32) -> (i32, i32) {
    %c0_i32 = arith.constant 0 : i32
    %c0_i32_0 = arith.constant 0 : i32
    %c0_i32_1 = arith.constant 0 : i32
    return %c0_i32, %c0_i32_0 : i32, i32
  }
  func.func @transform_2(%arg0: i32) -> (i32, i32) {
    %c0_i32 = arith.constant 0 : i32
    %c0_i32_0 = arith.constant 0 : i32
    %c0_i32_1 = arith.constant 0 : i32
    return %c0_i32, %c0_i32_0 : i32, i32
  }
  func.func @transform_3(%arg0: i32) -> (i32, i32, i32) {
    %c0_i32 = arith.constant 0 : i32
    %c0_i32_0 = arith.constant 0 : i32
    %c0_i32_1 = arith.constant 0 : i32
    return %arg0, %c0_i32, %c0_i32_0 : i32, i32, i32
  }
}

</mosaic_0001>

<bundles_post_ra>
// kernel: patch_merge.1
= control target key start
LH: loop header
LB: loop body
LE: loop exit
PB: predicated region body
PF: predicated region fallthrough
CT: control target
= control target key end

     0   :  { %8 = vsyncpa [#allocation3], 0  ;;  %s932_s0 = inlined_call_operand.vmem [shape: f32[16,2,8,128], index: 0, kind: input, shape index: {}]   ;;  %s933_s1 = inlined_call_operand.vmem [shape: f32[256,128], index: 1, kind: input, shape index: {}]   ;;  %s934_s2 = inlined_call_operand.vmem [shape: f32[1,128], index: 2, kind: input, shape index: {}]   ;;  %s935_s3 = inlined_call_operand.hbm [shape: f32[16,8,128], index: 3, kind: output, shape index: {}]  }
   0x1   :  { %10 = vsyncpa [#allocation3 + $0x1], 0  ;;  %s695_s12 = smov 0   ;;  %s697_s13 = smov 0  }
   0x2   :  { %s699_s14 = smov 0   ;;  %s701_s15 = smov 0  }
   0x3 LB: > { %s716_s16 = sadd.s32 4294967295, %s670_s15   ;;  %s451_s17 = sadd.s32 4294967294, %s670_s15   ;;  %s670_s15 = sphi %s701_s15, %s941_s15   ;;  %s666_s14 = sphi %s699_s14, %s940_s14   ;;  %s662_s13 = sphi %s697_s13, %s939_s13   ;;  %s658_s12 = sphi %s695_s12, %s938_s12  }
   0x4   : > { %s720_s18 = sadd.s32 1, %s670_s15   ;;  %s91_s19 = sadd.s32 1, %s666_s14 }
   0x5   : > { %s88_s20 = ssub.s32 %s670_s15, %s720_s18  ;;  %p101_p0 = scmp.ne.s32.totalorder %s666_s14, %s662_s13 }
   0x6   : > { %p89_p1 = scmp.eq.s32.totalorder %s88_s20, 0  ;;  %p102_p2 = scmp.eq.s32.totalorder %s716_s16, 3 }
   0x7   : > { %p107_p3 = scmp.ne.s32.totalorder %s662_s13, %s658_s12  ;;  %p108_p4 = scmp.eq.s32.totalorder %s451_s17, 3 }
   0x8   : > { %s731_s21 = scalar_select %p89_p1, %s666_s14, %s91_s19  }
   0x9   : > { %p733_p5 = por %p102_p2, %p101_p0  ;;  %p737_p6 = por %p108_p4, %p107_p3 }
   0xa   : > { %p454_p7 = scmp.ge.s32.totalorder %s670_s15, 1  ;;  %p142_p8 = scmp.lt.s32.totalorder %s670_s15, 5 }
   0xc   : > { %p143_p9 = pnand %p454_p7, %p142_p8 }
   0xd   : > { %s456_s24 = sshll.u32 (!%p143_p9), %s716_s16, 2  ;;  %v255_v0 = vld [vmem:[%s933_s1 + $0x80] sm:$0xff] (!%p143_p9)  ;;  %v256_v1 = vld [vmem:[%s933_s1 + $0x88] sm:$0xff] (!%p143_p9)  ;;  %v257_v5 = vld [vmem:[%s933_s1 + $0x90] sm:$0xff] (!%p143_p9)  ;;  %s164_s17 = sand.u32 (!%p143_p9), 1, %s662_s13  }
   0xe   : > { %146 = sbr.rel (%p143_p9) target bundleno = 416 (0x1a0), region = 32  ;;  %v239_v2 = vld [vmem:[%s933_s1] sm:$0xff] (!%p143_p9)  ;;  %p168_p10 = scmp.lt.s32.totalorder (!%p143_p9), %s456_s24, 15  ;;  %v511_v3 = vpack.c.bf16 (!%p143_p9), %v256_v1, %v255_v0  ;;  %v240_v4 = vld [vmem:[%s933_s1 + $0x8] sm:$0xff] (!%p143_p9)  ;;  %v258_v6 = vld [vmem:[%s933_s1 + $0x98] sm:$0xff] (!%p143_p9) }
   0xf   : > { %v513_v7 = vpack.c.bf16 (!%p143_p9), %v240_v4, %v239_v2  ;;  %v515_v8 = vpack.c.bf16 (!%p143_p9), %v258_v6, %v257_v5  ;;  %v241_v9 = vld [vmem:[%s933_s1 + $0x10] sm:$0xff] (!%p143_p9)  ;;  %v242_v10 = vld [vmem:[%s933_s1 + $0x18] sm:$0xff] (!%p143_p9)  ;;  %v259_v11 = vld [vmem:[%s933_s1 + $0xa0] sm:$0xff] (!%p143_p9)  ;;  %s455_s19 = sshll.u32 (!%p143_p9), %s164_s17, 5  ;;  %s891_s5 = scalar_lea.sflag (!%p143_p9), [#allocation3], %s164_s17 }
  0x10   : > { %512 = vmatprep.subr.bf16.mxu0 (!%p143_p9), %v511_v3  ;;  %543 = vmatprep.subr.bf16.mxu1 (!%p143_p9), %v511_v3  ;;  %v260_v12 = vld [vmem:[%s933_s1 + $0xa8] sm:$0xff] (!%p143_p9)  ;;  %v517_v13 = vpack.c.bf16 (!%p143_p9), %v242_v10, %v241_v9  ;;  %v243_v15 = vld [vmem:[%s933_s1 + $0x20] sm:$0xff] (!%p143_p9)  ;;  %v261_v17 = vld [vmem:[%s933_s1 + $0xb0] sm:$0xff] (!%p143_p9)  ;;  %s166_s26 = scalar_lea.vmem (!%p143_p9), [#allocation2], %s455_s19  ;;  %s672_s6 = smov (!%p143_p9), [#allocation2]  }
  0x11   : > { %514 = vmatpush3.bf16.msra.mxu0 (!%p143_p9), %v513_v7  ;;  %551 = vmatpush3.bf16.msra.mxu1 (!%p143_p9), %v513_v7  ;;  %v519_v14 = vpack.c.bf16 (!%p143_p9), %v260_v12, %v259_v11  ;;  %v244_v16 = vld [vmem:[%s933_s1 + $0x28] sm:$0xff] (!%p143_p9)  ;;  %v262_v18 = vld [vmem:[%s933_s1 + $0xb8] sm:$0xff] (!%p143_p9)  ;;  %v245_v22 = vld [vmem:[%s933_s1 + $0x30] sm:$0xff] (!%p143_p9)  ;;  %s389_s27 = sshll.u32 (!%p143_p9), %s166_s26, 4  ;;  %s612_s7 = sshll.u32 (!%p143_p9), %s672_s6, 4  ;;  %s882_s27 = int_to_ptr.vmem [resolvable:$true] %s389_s27  ;;  %s613_s7 = int_to_ptr.vmem [resolvable:$false] %s612_s7 }
  0x12   : > { %516 = vmatprep.subr.bf16.mxu0 (!%p143_p9), %v515_v8  ;;  %544 = vmatprep.subr.bf16.mxu1 (!%p143_p9), %v515_v8  ;;  %v521_v27 = vpack.c.bf16 (!%p143_p9), %v244_v16, %v243_v15  ;;  %v523_v31 = vpack.c.bf16 (!%p143_p9), %v262_v18, %v261_v17  ;;  %v246_v32 = vld [vmem:[%s933_s1 + $0x38] sm:$0xff] (!%p143_p9)  ;;  %v263_v34 = vld [vmem:[%s933_s1 + $0xc0] sm:$0xff] (!%p143_p9)  ;;  %v264_v35 = vld [vmem:[%s933_s1 + $0xc8] sm:$0xff] (!%p143_p9)  ;;  %p615_p0 = scmp.lt.s32.totalorder (!%p143_p9), %s882_s27, %s613_s7 }
  0x13   : > { %v525_v37 = vpack.c.bf16 (!%p143_p9), %v246_v32, %v245_v22  ;;  %v527_v38 = vpack.c.bf16 (!%p143_p9), %v264_v35, %v263_v34  ;;  %v247_v39 = vld [vmem:[%s933_s1 + $0x40] sm:$0xff] (!%p143_p9)  ;;  %v248_v40 = vld [vmem:[%s933_s1 + $0x48] sm:$0xff] (!%p143_p9)  ;;  %v265_v41 = vld [vmem:[%s933_s1 + $0xd0] sm:$0xff] (!%p143_p9) }
  0x14   : > { %v266_v42 = vld [vmem:[%s933_s1 + $0xd8] sm:$0xff] (!%p143_p9)  ;;  %v529_v43 = vpack.c.bf16 (!%p143_p9), %v248_v40, %v247_v39  ;;  %v249_v45 = vld [vmem:[%s933_s1 + $0x50] sm:$0xff] (!%p143_p9)  ;;  %v267_v47 = vld [vmem:[%s933_s1 + $0xe0] sm:$0xff] (!%p143_p9) }
  0x15   : > { %s943_s24 = smov (!%p168_p10, %s456_s24), 15  ;;  %518 = vmatpush3.bf16.msra.mxu0 %v517_v13  ;;  %552 = vmatpush3.bf16.msra.mxu1 %v517_v13  ;;  %v531_v44 = vpack.c.bf16 %v266_v42, %v265_v41  ;;  %v250_v46 = vld [vmem:[%s933_s1 + $0x58] sm:$0xff]  ;;  %v268_v48 = vld [vmem:[%s933_s1 + $0xe8] sm:$0xff]  ;;  %v251_v51 = vld [vmem:[%s933_s1 + $0x60] sm:$0xff] }
  0x16   : > { %s465_s28 = sshll.u32 %s943_s24, 4  ;;  %520 = vmatprep.subr.bf16.mxu0 %v519_v14  ;;  %545 = vmatprep.subr.bf16.mxu1 %v519_v14  ;;  %v533_v49 = vpack.c.bf16 %v250_v46, %v249_v45  ;;  %v535_v50 = vpack.c.bf16 %v268_v48, %v267_v47  ;;  %v252_v52 = vld [vmem:[%s933_s1 + $0x68] sm:$0xff]  ;;  %v269_v53 = vld [vmem:[%s933_s1 + $0xf0] sm:$0xff]  ;;  %v270_v54 = vld [vmem:[%s933_s1 + $0xf8] sm:$0xff] }
  0x17   : > { %s172_s8 = scalar_lea.vmem %s932_s0, %s465_s28  ;;  %v537_v55 = vpack.c.bf16 %v252_v52, %v251_v51  ;;  %v539_v56 = vpack.c.bf16 %v270_v54, %v269_v53  ;;  %v253_v57 = vld [vmem:[%s933_s1 + $0x70] sm:$0xff]  ;;  %v254_v58 = vld [vmem:[%s933_s1 + $0x78] sm:$0xff]  ;;  %v459_v40 = vld [vmem:[%s934_s2] ss:$0 sm:$0xff]  ;;  %s466_s28 = sshll.u32 %s716_s16, 9 }
  0x18   : > { %v789_v19 = vld [vmem:[%s172_s8] sm:$0xff]  ;;  %v791_v20 = vld [vmem:[%s172_s8 + $0x8] sm:$0xff]  ;;  %v793_v21 = vld [vmem:[%s172_s8 + $0x10] sm:$0xff]  ;;  %v541_v59 = vpack.c.bf16 %v254_v58, %v253_v57  ;;  %s887_s4 = scalar_lea.hbm %s935_s3, %s466_s28  ;;  %s608_s16 = scalar_lea.vmem %s882_s27, 512 }
  0x19   : > { %v183_v23 = vadd.f32 %v791_v20, %v789_v19  ;;  %v800_v24 = vld [vmem:[%s172_s8 + $0x18] sm:$0xff]  ;;  %v802_v25 = vld [vmem:[%s172_s8 + $0x20] sm:$0xff]  ;;  %v804_v26 = vld [vmem:[%s172_s8 + $0x28] sm:$0xff]  ;;  %522 = vmatpush3.bf16.msra.mxu0 %v521_v27  ;;  %553 = vmatpush3.bf16.msra.mxu1 %v521_v27  ;;  %p609_p11 = scmp.ne.s32.totalorder %s882_s27, %s608_s16 }
  0x1a   : > { %v186_v28 = vadd.f32 %v800_v24, %v793_v21  ;;  %v808_v29 = vld [vmem:[%s172_s8 + $0x30] sm:$0xff]  ;;  %v810_v30 = vld [vmem:[%s172_s8 + $0x38] sm:$0xff]  ;;  %v189_v33 = vadd.f32 %v804_v26, %v802_v25  ;;  %524 = vmatprep.subr.bf16.mxu0 %v523_v31  ;;  %546 = vmatprep.subr.bf16.mxu1 %v523_v31  ;;  %s614_s8 = scalar_lea.vmem %s613_s7, 1024 }
  0x1b   : > { %184 = vadd.xlane.f32.xlu0 %v183_v23  ;;  %v192_v36 = vadd.f32 %v810_v30, %v808_v29  ;;  %p610_p12 = pnand %p609_p11, %p733_p5  ;;  %p616_p1 = scmp.lt.s32.totalorder %s614_s8, %s608_s16 }
  0x1c   : > { %187 = vadd.xlane.f32.xlu1 %v186_v28 }
  0x1d   : > { %526 = vmatpush3.bf16.msra.mxu0 %v525_v37  ;;  %554 = vmatpush3.bf16.msra.mxu1 %v525_v37  ;;  %p611_p13 = pneg %p610_p12  ;;  %p617_p2 = por %p616_p1, %p615_p0 }
  0x1e   : > { %528 = vmatprep.subr.bf16.mxu0 %v527_v38  ;;  %547 = vmatprep.subr.bf16.mxu1 %v527_v38 }
  0x1f   : > { %190 = vadd.xlane.f32.xlu0 %v189_v33  ;;  %p618_p3 = pnand %p617_p2, %p611_p13 }
  0x20   : > { %193 = vadd.xlane.f32.xlu1 %v192_v36 }
  0x21   : > { %530 = vmatpush3.bf16.msra.mxu0 %v529_v43  ;;  %555 = vmatpush3.bf16.msra.mxu1 %v529_v43 }
  0x22   : > { %532 = vmatprep.subr.bf16.mxu0 %v531_v44  ;;  %548 = vmatprep.subr.bf16.mxu1 %v531_v44 }
  0x25   : > { %534 = vmatpush3.bf16.msra.mxu0 %v533_v49  ;;  %556 = vmatpush3.bf16.msra.mxu1 %v533_v49 }
  0x26   : > { %536 = vmatprep.subr.bf16.mxu0 %v535_v50  ;;  %549 = vmatprep.subr.bf16.mxu1 %v535_v50 }
  0x29   : > { %538 = vmatpush3.bf16.msra.mxu0 %v537_v55  ;;  %557 = vmatpush3.bf16.msra.mxu1 %v537_v55 }
  0x2a   : > { %540 = vmatprep.subr.bf16.mxu0 %v539_v56  ;;  %550 = vmatprep.subr.bf16.mxu1 %v539_v56 }
  0x2d   : > { %542 = vmatpush3.bf16.msra.mxu0 %v541_v59  ;;  %558 = vmatpush3.bf16.msra.mxu1 %v541_v59 }
  0xa8   : > { %v185_v60 = vpop.xlane.xlu0 %184 }
  0xa9   : > { %v195_v61 = vmul.f32 0.00390625, %v185_v60  ;;  %v188_v62 = vpop.xlane.xlu1 %187 }
  0xaa   : > { %v196_v63 = vmul.f32 0.00390625, %v188_v62 }
  0xab   : > { %v199_v0 = vsub.f32 %v789_v19, %v195_v61  ;;  %v200_v1 = vsub.f32 %v791_v20, %v195_v61 }
  0xac   : > { %v201_v2 = vsub.f32 %v793_v21, %v196_v63  ;;  %v202_v3 = vsub.f32 %v800_v24, %v196_v63  ;;  %v191_v4 = vpop.xlane.xlu0 %190 }
  0xad   : > { %v197_v5 = vmul.f32 0.00390625, %v191_v4  ;;  %335 = vmatprep.mubr.f32.mxu0 %v200_v1  ;;  %v194_v6 = vpop.xlane.xlu1 %193  ;;  %v207_v7 = vmul.f32 %v199_v0, %v199_v0  ;;  %v208_v8 = vmul.f32 %v200_v1, %v200_v1 }
  0xae   : > { %336 = vmatmul.mubr.f32.vlgmr.msra.gmra.mrb[0].mxu0 %v199_v0  ;;  %v198_v9 = vmul.f32 0.00390625, %v194_v6  ;;  %v209_v10 = vmul.f32 %v201_v2, %v201_v2  ;;  %v210_v11 = vmul.f32 %v202_v3, %v202_v3 }
  0xaf   : > { %v203_v12 = vsub.f32 %v802_v25, %v197_v5  ;;  %340 = vmatprep.mubr.f32.mxu0 %v202_v3  ;;  %v215_v13 = vadd.f32 %v208_v8, %v207_v7  ;;  %v204_v14 = vsub.f32 %v804_v26, %v197_v5 }
  0xb0   : > { %v205_v15 = vsub.f32 %v808_v29, %v198_v9  ;;  %v206_v16 = vsub.f32 %v810_v30, %v198_v9  ;;  %v218_v17 = vadd.f32 %v210_v11, %v209_v10 }
  0xb1   : > { %216 = vadd.xlane.f32.xlu0 %v215_v13  ;;  %345 = vmatprep.mubr.f32.mxu1 %v204_v14  ;;  %v211_v18 = vmul.f32 %v203_v12, %v203_v12  ;;  %v212_v19 = vmul.f32 %v204_v14, %v204_v14 }
  0xb2   : > { %341 = vmatmul.mubr.f32.gmra.mrb[2].mxu0 %v201_v2  ;;  %346 = vmatmul.mubr.f32.vlgmr.msra.gmra.mrb[0].mxu1 %v203_v12  ;;  %v213_v20 = vmul.f32 %v205_v15, %v205_v15  ;;  %v214_v21 = vmul.f32 %v206_v16, %v206_v16 }
  0xb3   : > { %219 = vadd.xlane.f32.xlu1 %v218_v17  ;;  %350 = vmatprep.mubr.f32.mxu1 %v206_v16  ;;  %v221_v22 = vadd.f32 %v212_v19, %v211_v18 }
  0xb4   : > { %v224_v23 = vadd.f32 %v214_v21, %v213_v20 }
  0xb5   : > { %222 = vadd.xlane.f32.xlu0 %v221_v22 }
  0xb6   : > { %351 = vmatmul.mubr.f32.gmra.mrb[2].mxu1 %v205_v15 }
  0xb7   : > { %225 = vadd.xlane.f32.xlu1 %v224_v23 }
 0x13e   : > { %v217_v24 = vpop.xlane.xlu0 %216 }
 0x13f   : > { %v227_v26 = vmul.f32 0.00390625, %v217_v24 }
 0x140   : > { %v220_v25 = vpop.xlane.xlu1 %219 }
 0x141   : > { %v228_v28 = vmul.f32 0.00390625, %v220_v25  ;;  %v231_v29 = vadd.f32 1e-05, %v227_v26 }
 0x142   : > { %v223_v27 = vpop.xlane.xlu0 %222 }
 0x143   : > { %v229_v30 = vmul.f32 0.00390625, %v223_v27  ;;  %v232_v32 = vadd.f32 1e-05, %v228_v28  ;;  %600 = vrsqrt.f32 %v231_v29 }
 0x144   : > { %v226_v31 = vpop.xlane.xlu1 %225 }
 0x145   : > { %v233_v33 = vadd.f32 1e-05, %v229_v30  ;;  %v230_v34 = vmul.f32 0.00390625, %v226_v31  ;;  %602 = vrsqrt.f32 %v232_v32 }
 0x147   : > { %604 = vrsqrt.f32 %v233_v33  ;;  %v234_v35 = vadd.f32 1e-05, %v230_v34 }
 0x149   : > { %606 = vrsqrt.f32 %v234_v35 }
 0x14d   : > { %v601_v39 = vpop.eup %600 }
 0x14f   : > { %v603_v46 = vpop.eup %602 }
 0x151   : > { %v605_v50 = vpop.eup %604 }
 0x153   : > { %v607_v58 = vpop.eup %606 }
 0x181   : > { %v499_v36 = vpop.f32.mrb[0].mxu0 }
 0x182   : > { %v500_v37 = vpop.f32.mrb[1].mxu0 }
 0x183   : > { %v501_v38 = vadd.f32 %v500_v37, %v499_v36 }
 0x185   : > { %v356_v41 = vmul.f32 %v601_v39, %v501_v38  ;;  %v502_v42 = vpop.f32.mrb[2].mxu0  ;;  %v505_v43 = vpop.f32.mrb[0].mxu1 }
 0x186   : > { %v503_v44 = vpop.f32.mrb[3].mxu0  ;;  %v506_v45 = vpop.f32.mrb[1].mxu1 }
 0x187   : > { %v367_v47 = vadd.f32 %v459_v40, %v356_v41  ;;  %v504_v48 = vadd.f32 %v503_v44, %v502_v42  ;;  %v507_v49 = vadd.f32 %v506_v45, %v505_v43 }
 0x189   : > { %371 = vst [vmem:[%s166_s26] sm:$0xff] %v367_v47  ;;  %v357_v51 = vmul.f32 %v603_v46, %v504_v48  ;;  %v358_v52 = vmul.f32 %v605_v50, %v507_v49  ;;  %v508_v53 = vpop.f32.mrb[2].mxu1 }
 0x18a   : > { %v509_v54 = vpop.f32.mrb[3].mxu1 }
 0x18b   : > { %v368_v55 = vadd.f32 %v459_v40, %v357_v51  ;;  %v369_v56 = vadd.f32 %v459_v40, %v358_v52  ;;  %v510_v57 = vadd.f32 %v509_v54, %v508_v53 }
 0x18d   : > { %372 = vst [vmem:[%s166_s26 + $0x8] sm:$0xff] %v368_v55  ;;  %373 = vst [vmem:[%s166_s26 + $0x10] sm:$0xff] %v369_v56  ;;  %v359_v59 = vmul.f32 %v607_v58, %v510_v57 }
 0x18f   : > { %v370_v60 = vadd.f32 %v459_v40, %v359_v59 }
 0x191   : > { %374 = vst [vmem:[%s166_s26 + $0x18] sm:$0xff] %v370_v60 }
 0x192   : > { %621 = shalt.err (!%p618_p3)
}
 0x193   : > { %s622_s9 = scalar_lea.hbm %s887_s4, 512  ;;  %s626_s11 = scalar_lea.hbm %s935_s3, 2048 }
 0x194   : > { %p623_p4 = scmp.ne.s32.totalorder %s887_s4, %s622_s9  ;;  %p627_p9 = scmp.lt.u32.totalorder %s887_s4, %s935_s3 }
 0x195   : > { %p628_p10 = scmp.lt.u32.totalorder %s626_s11, %s622_s9  ;;  %p630_p12 = scmp.lt.u32.totalorder %s622_s9, %s887_s4 }
 0x196   : > { %p624_p7 = pnand %p623_p4, %p733_p5 }
 0x197   : > { %p629_p11 = por %p628_p10, %p627_p9 }
 0x198   : > { %p625_p8 = pneg %p624_p7 }
 0x199   : > { %p631_p13 = por %p630_p12, %p629_p11 }
 0x19b   : > { %p632_p0 = pnand %p631_p13, %p625_p8 }
 0x19d   : > { %635 = shalt.err (!%p632_p0)
}
 0x19e   : > { %s673_s20 = smov 128   ;;  %s674_s25 = smov 8  }
 0x19f   : > { %559 = dma.vmem_to_hbm [thread:$0]  (%p733_p5), %s882_s27, 512, %s887_s4, %s891_s5, %s673_s20, %s673_s20, %s674_s25  }
 0x1a0 PF: > { %p565_p1 = scmp.ge.s32.totalorder %s670_s15, 2  ;;  %s404_s26 = sand.u32 1, %s658_s12  }
 0x1a1   : > { %s405_s28 = scalar_lea.sflag [#allocation3], %s404_s26 }
 0x1a2   : > { %p562_p2 = pnand %p565_p1, %p737_p6 }
 0x1a4   : > { %653 = dma.done.wait (!%p562_p2), %s405_s28, 512  }
 0x1a5   : > { %655 = vsyncadd (!%p562_p2), %s405_s28, 4294966784  ;;  %p13_p3 = scmp.ge.s32.totalorder %s720_s18, 6   ;;  %s938_s12 = smov %s662_s13 }
 0x1a6   : > { %s939_s13 = smov %s666_s14  ;;  %s940_s14 = smov %s731_s21 }
 0x1a7   : > { %s941_s15 = smov %s720_s18  ;;  %15 = sbr.rel (!%p13_p3) target bundleno = 3 (0x3), region = 67 }
 0x1ae   :  { %410 = vsyncpa [#allocation3], 1 }
 0x1af   :  { %412 = vsyncpa [#allocation3 + $0x1], 1 }

</bundles_post_ra>
